<compile_context>
chip_gen: v5e
topology: v5e:2x2
jax: 0.10.0
libtpu: 0.0.40
codegen_flags: <defaults>
</compile_context>

<pallas_src>
import functools

import jax
import jax.numpy as jnp
from jax import lax
from jax.experimental import pallas as pl
from jax.experimental.pallas import tpu as pltpu


# ----------------------------- in-kernel math ------------------------------

_SQRT_2_OVER_PI = 0.7978845608028654


def _gelu(x):
    # tanh-approximation GELU (PyTorch nn.GELU(approximate='tanh')).
    return 0.5 * x * (1.0 + jnp.tanh(_SQRT_2_OVER_PI * (x + 0.044715 * (x * x * x))))


def _tap_masks(pos, L, *, k, dil, pad):
    """Per-tap validity masks, shared by both convs (hoisted, computed once)."""
    masks = []
    for t in range(k):
        off = t * dil - pad
        masks.append(None if off == 0 else ((pos + off >= 0) & (pos + off < L)))
    return masks


def _im2col(v, masks, *, k, dil, pad):
    """Tap-stacked matrix for a stride-1 'same' 1-D conv, built in registers.

    v     : (C, nb*L) value (batch flattened into lanes)
    masks : per-tap (1, nb*L) boolean validity masks (None for the 0-offset tap)
    Returns (k*C, nb*L): row-block t holds v shifted by (t*dil - pad) lanes with
    out-of-sample positions zeroed.  Shifts are pltpu.roll lane rotations (XLU),
    so there is no 2L concat, no padded scratch and no masked partial store.
    """
    n = v.shape[-1]
    taps = []
    for t in range(k):
        off = t * dil - pad
        if off == 0:
            taps.append(v)
        else:
            tap = pltpu.roll(v, (-off) % n, axis=1)          # tap[l] == v[l + off]
            taps.append(jnp.where(masks[t], tap, jnp.zeros_like(tap)))
    return jnp.concatenate(taps, axis=0)                      # (k*C, nb*L)


# ------------------------------- the kernel --------------------------------

def temporal_block_kernel(x_ref, w1a_ref, b1_ref, bd_ref, w2_ref, b2_ref,
                          out_ref, *, k, dil, pad, L, c_out):
    """One grid step = one group of `nb` batch samples, flattened into lanes.

    x_ref   : (C_in, nb*L)       input slab (matmul dtype: bf16 or f32)
    w1a_ref : (2*C_out, k*C_in)  [conv1 (BN1 folded); 1x1 downsample] tap-major
    b1_ref  : (C_out, 1) f32     conv1 bias + BN1 (eval) shift, folded
    bd_ref  : (C_out, 1) f32     downsample bias
    w2_ref  : (C_out, k*C_out)   conv2 weight, BN2 folded, tap-major
    b2_ref  : (C_out, 1) f32     conv2 bias + BN2 shift, folded
    out_ref : (C_out, nb*L)
    """
    nbl = x_ref.shape[-1]
    # Lane position within its own sample; boundary masks shared by both convs.
    pos = lax.broadcasted_iota(jnp.int32, (1, nbl), 1) % L
    masks = _tap_masks(pos, L, k=k, dil=dil, pad=pad)

    x = x_ref[...]                                            # (C_in, nb*L)

    # conv1 (+ folded BN1) AND the 1x1 residual conv in ONE MXU matmul on the
    # shared im2col operand (wd occupies the offset-0-tap rows of w1a).
    y = jnp.dot(w1a_ref[...], _im2col(x, masks, k=k, dil=dil, pad=pad),
                preferred_element_type=jnp.float32)           # (2*C_out, nb*L) f32
    h = _gelu(y[:c_out] + b1_ref[...])        # Dropout(p=0.2) is identity in eval
    res = y[c_out:] + bd_ref[...]                             # residual path

    # conv2 (+ folded BN2) -> GELU, then residual add -> GELU.
    o = _gelu(jnp.dot(w2_ref[...],
                      _im2col(h.astype(w2_ref.dtype), masks, k=k, dil=dil, pad=pad),
                      preferred_element_type=jnp.float32) + b2_ref[...])
    out_ref[...] = _gelu(o + res).astype(out_ref.dtype)


# ------------------------------ JAX wrapper ---------------------------------

def _choose_samples_per_block(N, L, samples_per_block):
    if samples_per_block is None:
        # Smallest batch group whose lane extent is 128-aligned -> longest
        # "parallel" grid (feeds both v7x TCs and the software pipeline) while
        # keeping every store lane-dense.  Toy sizes fall back to one step.
        nb = N
        for cand in range(1, N + 1):
            if N % cand == 0 and (cand * L) % 128 == 0:
                nb = cand
                break
    else:
        nb = samples_per_block
    assert N % nb == 0
    assert (nb * L) % 128 == 0 or nb == N, "block lane extent must be 128-aligned"
    return nb


def temporal_block_forward(x, fp, *, k, dil, pad, samples_per_block=None,
                           out_dtype=jnp.float32, vmem_limit_bytes=None):
    """x: (N, C_in, L) float32; fp: folded params dict (see fold_params).

    out_dtype=jnp.bfloat16 halves output HBM traffic for mem-bound production
    sizes; default stays f32 for parity with the PyTorch module.
    """
    N, C_in, L = x.shape
    C_out = fp["w1a"].shape[0] // 2
    assert fp["w1a"].shape[1] == k * C_in
    assert (k - 1) * dil == 2 * pad, "expect 'same' conv (L_out == L_in)"
    assert C_out % 8 == 0, "pad C_out to a sublane multiple host-side"

    nb = _choose_samples_per_block(N, L, samples_per_block)

    # Lane-flatten the batch: (N, C_in, L) -> (C_in, N*L), cast to matmul dtype
    # (layout plumbing + halved input HBM bytes, not compute-hoisting).
    mm_dtype = fp["w1a"].dtype
    x_f = jnp.transpose(x, (1, 0, 2)).reshape(C_in, N * L).astype(mm_dtype)

    kernel = functools.partial(temporal_block_kernel,
                               k=k, dil=dil, pad=pad, L=L, c_out=C_out)
    cp_kwargs = dict(dimension_semantics=("parallel",))
    if vmem_limit_bytes is not None:
        cp_kwargs["vmem_limit_bytes"] = vmem_limit_bytes

    out_f = pl.pallas_call(
        kernel,
        out_shape=jax.ShapeDtypeStruct((C_out, N * L), out_dtype),
        grid_spec=pltpu.PrefetchScalarGridSpec(
            num_scalar_prefetch=0,
            grid=(N // nb,),
            in_specs=[
                pl.BlockSpec((C_in, nb * L), lambda g: (0, g)),       # x (lane-flat)
                pl.BlockSpec((2 * C_out, k * C_in), lambda g: (0, 0)),  # w1 + wd fused
                pl.BlockSpec((C_out, 1), lambda g: (0, 0)),           # b1 (+BN1)
                pl.BlockSpec((C_out, 1), lambda g: (0, 0)),           # bd
                pl.BlockSpec((C_out, k * C_out), lambda g: (0, 0)),   # w2 (+BN2 scale)
                pl.BlockSpec((C_out, 1), lambda g: (0, 0)),           # b2 (+BN2)
            ],
            out_specs=pl.BlockSpec((C_out, nb * L), lambda g: (0, g)),
        ),
        compiler_params=pltpu.CompilerParams(**cp_kwargs),
    )(x_f, fp["w1a"], fp["b1"], fp["bd"], fp["w2"], fp["b2"])

    return jnp.transpose(out_f.reshape(C_out, N, L), (1, 0, 2))


# ------------------------- deterministic parameters -------------------------

def init_params(key, c_in, c_out, k):
    ks = jax.random.split(key, 16)

    def u(kk, shape, fan):
        bound = 1.0 / float(fan) ** 0.5
        return jax.random.uniform(kk, shape, jnp.float32, -bound, bound)

    return {
        # Conv1d weights/biases (PyTorch layout: (out, in, k))
        "w1": u(ks[0], (c_out, c_in, k), c_in * k),
        "b1": u(ks[1], (c_out,), c_in * k),
        "w2": u(ks[2], (c_out, c_out, k), c_out * k),
        "b2": u(ks[3], (c_out,), c_out * k),
        "wd": u(ks[4], (c_out, c_in, 1), c_in),
        "bd": u(ks[5], (c_out,), c_in),
        # BatchNorm1d (eval mode) parameters / running stats
        "g1": 1.0 + 0.1 * jax.random.normal(ks[6], (c_out,), jnp.float32),
        "be1": 0.1 * jax.random.normal(ks[7], (c_out,), jnp.float32),
        "m1": 0.1 * jax.random.normal(ks[8], (c_out,), jnp.float32),
        "v1": jax.random.uniform(ks[9], (c_out,), jnp.float32, 0.5, 1.5),
        "g2": 1.0 + 0.1 * jax.random.normal(ks[10], (c_out,), jnp.float32),
        "be2": 0.1 * jax.random.normal(ks[11], (c_out,), jnp.float32),
        "m2": 0.1 * jax.random.normal(ks[12], (c_out,), jnp.float32),
        "v2": jax.random.uniform(ks[13], (c_out,), jnp.float32, 0.5, 1.5),
    }


def fold_params(p, *, k, dil, pad, eps=1e-5, matmul_dtype=jnp.bfloat16):
    """Fold eval-mode BN into the conv weights/biases (exact: conv is linear),
    flatten tap-major for the im2col matmul (W[o, t*C+i] = w[o, i, t] * s[o]),
    fuse the 1x1 downsample into conv1's augmented LHS, and cast the MXU
    operands to `matmul_dtype` (biases stay f32)."""
    c_out, c_in, _ = p["w1"].shape
    s1 = p["g1"] / jnp.sqrt(p["v1"] + eps)
    s2 = p["g2"] / jnp.sqrt(p["v2"] + eps)
    w1 = (jnp.transpose(p["w1"], (0, 2, 1)) * s1[:, None, None]).reshape(c_out, k * c_in)
    w2 = (jnp.transpose(p["w2"], (0, 2, 1)) * s2[:, None, None]).reshape(c_out, k * c_out)
    b1 = ((p["b1"] - p["m1"]) * s1 + p["be1"])[:, None]
    b2 = ((p["b2"] - p["m2"]) * s2 + p["be2"])[:, None]

    # Residual path: 1x1 downsample conv, or exact identity when the PyTorch
    # module has no downsample (c_in == c_out).
    if p.get("wd") is not None:
        wd = p["wd"][:, :, 0]
        bd = p["bd"][:, None]
    else:
        assert c_in == c_out
        wd = jnp.eye(c_out, dtype=jnp.float32)
        bd = jnp.zeros((c_out, 1), jnp.float32)

    # Fuse wd into the offset-0-tap columns of extra output rows: one MXU issue
    # on the shared im2col operand yields conv1 preact + residual preact.
    assert pad % dil == 0 and 0 <= pad // dil < k, "offset-0 tap must exist"
    t0 = pad // dil
    wd_rows = jnp.zeros((c_out, k * c_in), jnp.float32)
    wd_rows = wd_rows.at[:, t0 * c_in:(t0 + 1) * c_in].set(wd)
    w1a = jnp.concatenate([w1, wd_rows], axis=0)              # (2*C_out, k*C_in)

    return dict(w1a=w1a.astype(matmul_dtype), b1=b1, bd=bd,
                w2=w2.astype(matmul_dtype), b2=b2)


# ------------------------------ pure-JAX reference --------------------------

def reference(x, p, *, k, dil, pad, eps=1e-5, approximate_gelu=True,
              matmul_dtype=None):
    cast = (lambda a: a.astype(matmul_dtype)) if matmul_dtype is not None else (lambda a: a)

    def conv1d(inp, w, b):
        y = lax.conv_general_dilated(cast(inp), cast(w), window_strides=(1,),
                                     padding=[(pad, pad)], rhs_dilation=(dil,),
                                     dimension_numbers=("NCH", "OIH", "NCH"),
                                     preferred_element_type=jnp.float32)
        return y + b[None, :, None]

    def bn(z, g, be, m, v):
        return ((z - m[None, :, None]) / jnp.sqrt(v[None, :, None] + eps)
                * g[None, :, None] + be[None, :, None])

    gelu = lambda z: jax.nn.gelu(z, approximate=approximate_gelu)
    h = gelu(bn(conv1d(x, p["w1"], p["b1"]), p["g1"], p["be1"], p["m1"], p["v1"]))
    out = gelu(bn(conv1d(h, p["w2"], p["b2"]), p["g2"], p["be2"], p["m2"], p["v2"]))
    res = jnp.einsum("oi,nil->nol", cast(p["wd"][:, :, 0]), cast(x),
                     preferred_element_type=jnp.float32) + p["bd"][None, :, None]
    return gelu(out + res)


# ----------------------------------- main -----------------------------------

if __name__ == "__main__":
    N, C_in, C_out, L = 2, 8, 16, 16
    k, dil, pad = 3, 1, 1                      # stride=1, 'same': L_out == L_in

    key = jax.random.PRNGKey(0)
    kx, kp = jax.random.split(key)
    x = jax.random.normal(kx, (N, C_in, L), jnp.float32)
    raw = init_params(kp, C_in, C_out, k)

    ref_tanh = reference(x, raw, k=k, dil=dil, pad=pad, approximate_gelu=True)
    ref_erf = reference(x, raw, k=k, dil=dil, pad=pad, approximate_gelu=False)

    # ---- f32 MXU operands: tight check of the fused/folded restructuring ----
    fp32 = fold_params(raw, k=k, dil=dil, pad=pad, matmul_dtype=jnp.float32)
    y32 = jax.block_until_ready(temporal_block_forward(x, fp32, k=k, dil=dil, pad=pad))
    assert y32.shape == (N, C_out, L)
    err = float(jnp.max(jnp.abs(y32 - ref_tanh)))
    assert err < 2e-3, f"f32 kernel vs tanh-GELU reference: {err}"
    err = float(jnp.max(jnp.abs(y32 - ref_erf)))
    assert err < 5e-3, f"f32 kernel vs exact-GELU reference: {err}"

    # ---- bf16 MXU operands (f32 accumulate / f32 elementwise): perf config ---
    fpbf = fold_params(raw, k=k, dil=dil, pad=pad, matmul_dtype=jnp.bfloat16)
    ybf = jax.block_until_ready(temporal_block_forward(x, fpbf, k=k, dil=dil, pad=pad))
    assert ybf.shape == (N, C_out, L)
    ref_bf = reference(x, raw, k=k, dil=dil, pad=pad, approximate_gelu=True,
                       matmul_dtype=jnp.bfloat16)
    err = float(jnp.max(jnp.abs(ybf - ref_bf)))
    assert err < 5e-2, f"bf16 kernel vs bf16-cast reference: {err}"
    err = float(jnp.max(jnp.abs(ybf - ref_erf)))
    assert err < 1e-1, f"bf16 kernel vs exact f32 reference: {err}"

    print("KERNEL_OK")
</pallas_src>

<mosaic_0001>
module attributes {stable_mosaic.version = 11 : i64} {
  func.func @temporal_block_kernel(%arg0: i32, %arg1: memref<8x32xf32, #tpu.memory_space<vmem>>, %arg2: memref<32x24xf32, #tpu.memory_space<vmem>>, %arg3: memref<16x1xf32, #tpu.memory_space<vmem>>, %arg4: memref<16x1xf32, #tpu.memory_space<vmem>>, %arg5: memref<16x48xf32, #tpu.memory_space<vmem>>, %arg6: memref<16x1xf32, #tpu.memory_space<vmem>>, %arg7: memref<16x32xf32, #tpu.memory_space<vmem>>) attributes {dimension_semantics = [#tpu.dimension_semantics<parallel>], iteration_bounds = array<i64: 1>, scalar_prefetch = 0 : i64, scratch_operands = 0 : i64, tpu.core_type = #tpu.core_type<tc>, window_params = [{transform_indices = @transform_0, window_bounds = array<i64: 8, 32>}, {pipeline_mode = #tpu.pipeline_mode<synchronous>, transform_indices = @transform_1, window_bounds = array<i64: 32, 24>}, {pipeline_mode = #tpu.pipeline_mode<synchronous>, transform_indices = @transform_2, window_bounds = array<i64: 16, 1>}, {pipeline_mode = #tpu.pipeline_mode<synchronous>, transform_indices = @transform_3, window_bounds = array<i64: 16, 1>}, {pipeline_mode = #tpu.pipeline_mode<synchronous>, transform_indices = @transform_4, window_bounds = array<i64: 16, 48>}, {pipeline_mode = #tpu.pipeline_mode<synchronous>, transform_indices = @transform_5, window_bounds = array<i64: 16, 1>}, {transform_indices = @transform_6, window_bounds = array<i64: 16, 32>}]} {
    %0 = tpu.iota {dimensions = array<i32: 1>} : vector<1x32xi32>
    %c16_i32 = arith.constant 16 : i32
    %c0_i32 = arith.constant 0 : i32
    %1 = arith.cmpi eq, %c16_i32, %c0_i32 : i32
    %c1_i32 = arith.constant 1 : i32
    %2 = arith.select %1, %c1_i32, %c16_i32 : i32
    %3 = vector.broadcast %2 : i32 to vector<1x32xi32>
    %4 = arith.remsi %0, %3 : vector<1x32xi32>
    %c0_i32_0 = arith.constant 0 : i32
    %5 = vector.broadcast %c0_i32_0 : i32 to vector<1x32xi32>
    %6 = arith.cmpi ne, %4, %5 : vector<1x32xi32>
    %c0_i32_1 = arith.constant 0 : i32
    %7 = vector.broadcast %c0_i32_1 : i32 to vector<1x32xi32>
    %8 = arith.cmpi slt, %4, %7 : vector<1x32xi32>
    %c0_i32_2 = arith.constant 0 : i32
    %9 = arith.cmpi slt, %2, %c0_i32_2 : i32
    %10 = vector.broadcast %9 : i1 to vector<1x32xi1>
    %11 = vector.broadcast %10 : vector<1x32xi1> to vector<1x32xi1>
    %12 = arith.xori %8, %11 : vector<1x32xi1>
    %13 = arith.andi %12, %6 : vector<1x32xi1>
    %14 = vector.broadcast %2 : i32 to vector<1x32xi32>
    %15 = arith.addi %4, %14 : vector<1x32xi32>
    %16 = arith.select %13, %15, %4 : vector<1x32xi1>, vector<1x32xi32>
    %c-1_i32 = arith.constant -1 : i32
    %17 = vector.broadcast %c-1_i32 : i32 to vector<1x32xi32>
    %18 = arith.addi %16, %17 : vector<1x32xi32>
    %c0_i32_3 = arith.constant 0 : i32
    %19 = vector.broadcast %c0_i32_3 : i32 to vector<1x32xi32>
    %20 = arith.cmpi sge, %18, %19 : vector<1x32xi32>
    %c-1_i32_4 = arith.constant -1 : i32
    %21 = vector.broadcast %c-1_i32_4 : i32 to vector<1x32xi32>
    %22 = arith.addi %16, %21 : vector<1x32xi32>
    %c16_i32_5 = arith.constant 16 : i32
    %23 = vector.broadcast %c16_i32_5 : i32 to vector<1x32xi32>
    %24 = arith.cmpi slt, %22, %23 : vector<1x32xi32>
    %25 = arith.andi %20, %24 : vector<1x32xi1>
    %c1_i32_6 = arith.constant 1 : i32
    %26 = vector.broadcast %c1_i32_6 : i32 to vector<1x32xi32>
    %27 = arith.addi %16, %26 : vector<1x32xi32>
    %c0_i32_7 = arith.constant 0 : i32
    %28 = vector.broadcast %c0_i32_7 : i32 to vector<1x32xi32>
    %29 = arith.cmpi sge, %27, %28 : vector<1x32xi32>
    %c1_i32_8 = arith.constant 1 : i32
    %30 = vector.broadcast %c1_i32_8 : i32 to vector<1x32xi32>
    %31 = arith.addi %16, %30 : vector<1x32xi32>
    %c16_i32_9 = arith.constant 16 : i32
    %32 = vector.broadcast %c16_i32_9 : i32 to vector<1x32xi32>
    %33 = arith.cmpi slt, %31, %32 : vector<1x32xi32>
    %34 = arith.andi %29, %33 : vector<1x32xi1>
    %c0 = arith.constant 0 : index
    %c0_10 = arith.constant 0 : index
    %35 = vector.load %arg1[%c0, %c0_10] : memref<8x32xf32, #tpu.memory_space<vmem>>, vector<8x32xf32>
    %c0_11 = arith.constant 0 : index
    %c0_12 = arith.constant 0 : index
    %36 = vector.load %arg2[%c0_11, %c0_12] : memref<32x24xf32, #tpu.memory_space<vmem>>, vector<32x24xf32>
    %c1_i32_13 = arith.constant 1 : i32
    %37 = tpu.dynamic_rotate %35 by %c1_i32_13 dim 1 : vector<8x32xf32>, i32 -> vector<8x32xf32>
    %cst = arith.constant 0.000000e+00 : f32
    %38 = vector.broadcast %cst : f32 to vector<8x32xf32>
    %39 = vector.shape_cast %25 : vector<1x32xi1> to vector<1x32xi1>
    %40 = vector.broadcast %39 : vector<1x32xi1> to vector<8x32xi1>
    %41 = arith.select %40, %37, %38 : vector<8x32xi1>, vector<8x32xf32>
    %c31_i32 = arith.constant 31 : i32
    %42 = tpu.dynamic_rotate %35 by %c31_i32 dim 1 : vector<8x32xf32>, i32 -> vector<8x32xf32>
    %cst_14 = arith.constant 0.000000e+00 : f32
    %43 = vector.broadcast %cst_14 : f32 to vector<8x32xf32>
    %44 = vector.shape_cast %34 : vector<1x32xi1> to vector<1x32xi1>
    %45 = vector.broadcast %44 : vector<1x32xi1> to vector<8x32xi1>
    %46 = arith.select %45, %42, %43 : vector<8x32xi1>, vector<8x32xf32>
    %47 = tpu.concatenate %41, %35, %46 in 0 : vector<8x32xf32>, vector<8x32xf32>, vector<8x32xf32> -> vector<24x32xf32>
    %cst_15 = arith.constant dense<0.000000e+00> : vector<32x32xf32>
    %48 = tpu.matmul %36, %47, %cst_15 {dimension_numbers = #tpu.dot_dimension_numbers<[1], [0], [0], [1], [0, 0, 1, 1], [], []>} : vector<32x24xf32>, vector<24x32xf32>, vector<32x32xf32> -> vector<32x32xf32>
    %49 = vector.extract_strided_slice %48 {offsets = [0, 0], sizes = [16, 32], strides = [1, 1]} : vector<32x32xf32> to vector<16x32xf32>
    %c0_16 = arith.constant 0 : index
    %c0_17 = arith.constant 0 : index
    %50 = vector.load %arg3[%c0_16, %c0_17] : memref<16x1xf32, #tpu.memory_space<vmem>>, vector<16x1xf32>
    %51 = vector.broadcast %50 : vector<16x1xf32> to vector<16x32xf32>
    %52 = arith.addf %49, %51 : vector<16x32xf32>
    %cst_18 = arith.constant 5.000000e-01 : f32
    %53 = vector.broadcast %cst_18 : f32 to vector<16x32xf32>
    %54 = arith.mulf %53, %52 : vector<16x32xf32>
    %55 = arith.mulf %52, %52 : vector<16x32xf32>
    %56 = arith.mulf %55, %52 : vector<16x32xf32>
    %cst_19 = arith.constant 4.471500e-02 : f32
    %57 = vector.broadcast %cst_19 : f32 to vector<16x32xf32>
    %58 = arith.mulf %57, %56 : vector<16x32xf32>
    %59 = arith.addf %52, %58 : vector<16x32xf32>
    %cst_20 = arith.constant 0.797884583 : f32
    %60 = vector.broadcast %cst_20 : f32 to vector<16x32xf32>
    %61 = arith.mulf %60, %59 : vector<16x32xf32>
    %62 = math.tanh %61 : vector<16x32xf32>
    %cst_21 = arith.constant 1.000000e+00 : f32
    %63 = vector.broadcast %cst_21 : f32 to vector<16x32xf32>
    %64 = arith.addf %63, %62 : vector<16x32xf32>
    %65 = arith.mulf %54, %64 : vector<16x32xf32>
    %66 = vector.extract_strided_slice %48 {offsets = [16, 0], sizes = [16, 32], strides = [1, 1]} : vector<32x32xf32> to vector<16x32xf32>
    %c0_22 = arith.constant 0 : index
    %c0_23 = arith.constant 0 : index
    %67 = vector.load %arg4[%c0_22, %c0_23] : memref<16x1xf32, #tpu.memory_space<vmem>>, vector<16x1xf32>
    %68 = vector.broadcast %67 : vector<16x1xf32> to vector<16x32xf32>
    %69 = arith.addf %66, %68 : vector<16x32xf32>
    %c0_24 = arith.constant 0 : index
    %c0_25 = arith.constant 0 : index
    %70 = vector.load %arg5[%c0_24, %c0_25] : memref<16x48xf32, #tpu.memory_space<vmem>>, vector<16x48xf32>
    %c1_i32_26 = arith.constant 1 : i32
    %71 = tpu.dynamic_rotate %65 by %c1_i32_26 dim 1 : vector<16x32xf32>, i32 -> vector<16x32xf32>
    %cst_27 = arith.constant 0.000000e+00 : f32
    %72 = vector.broadcast %cst_27 : f32 to vector<16x32xf32>
    %73 = vector.shape_cast %25 : vector<1x32xi1> to vector<1x32xi1>
    %74 = vector.broadcast %73 : vector<1x32xi1> to vector<16x32xi1>
    %75 = arith.select %74, %71, %72 : vector<16x32xi1>, vector<16x32xf32>
    %c31_i32_28 = arith.constant 31 : i32
    %76 = tpu.dynamic_rotate %65 by %c31_i32_28 dim 1 : vector<16x32xf32>, i32 -> vector<16x32xf32>
    %cst_29 = arith.constant 0.000000e+00 : f32
    %77 = vector.broadcast %cst_29 : f32 to vector<16x32xf32>
    %78 = vector.shape_cast %34 : vector<1x32xi1> to vector<1x32xi1>
    %79 = vector.broadcast %78 : vector<1x32xi1> to vector<16x32xi1>
    %80 = arith.select %79, %76, %77 : vector<16x32xi1>, vector<16x32xf32>
    %81 = tpu.concatenate %75, %65, %80 in 0 : vector<16x32xf32>, vector<16x32xf32>, vector<16x32xf32> -> vector<48x32xf32>
    %cst_30 = arith.constant dense<0.000000e+00> : vector<16x32xf32>
    %82 = tpu.matmul %70, %81, %cst_30 {dimension_numbers = #tpu.dot_dimension_numbers<[1], [0], [0], [1], [0, 0, 1, 1], [], []>} : vector<16x48xf32>, vector<48x32xf32>, vector<16x32xf32> -> vector<16x32xf32>
    %c0_31 = arith.constant 0 : index
    %c0_32 = arith.constant 0 : index
    %83 = vector.load %arg6[%c0_31, %c0_32] : memref<16x1xf32, #tpu.memory_space<vmem>>, vector<16x1xf32>
    %84 = vector.broadcast %83 : vector<16x1xf32> to vector<16x32xf32>
    %85 = arith.addf %82, %84 : vector<16x32xf32>
    %cst_33 = arith.constant 5.000000e-01 : f32
    %86 = vector.broadcast %cst_33 : f32 to vector<16x32xf32>
    %87 = arith.mulf %86, %85 : vector<16x32xf32>
    %88 = arith.mulf %85, %85 : vector<16x32xf32>
    %89 = arith.mulf %88, %85 : vector<16x32xf32>
    %cst_34 = arith.constant 4.471500e-02 : f32
    %90 = vector.broadcast %cst_34 : f32 to vector<16x32xf32>
    %91 = arith.mulf %90, %89 : vector<16x32xf32>
    %92 = arith.addf %85, %91 : vector<16x32xf32>
    %cst_35 = arith.constant 0.797884583 : f32
    %93 = vector.broadcast %cst_35 : f32 to vector<16x32xf32>
    %94 = arith.mulf %93, %92 : vector<16x32xf32>
    %95 = math.tanh %94 : vector<16x32xf32>
    %cst_36 = arith.constant 1.000000e+00 : f32
    %96 = vector.broadcast %cst_36 : f32 to vector<16x32xf32>
    %97 = arith.addf %96, %95 : vector<16x32xf32>
    %98 = arith.mulf %87, %97 : vector<16x32xf32>
    %99 = arith.addf %98, %69 : vector<16x32xf32>
    %cst_37 = arith.constant 5.000000e-01 : f32
    %100 = vector.broadcast %cst_37 : f32 to vector<16x32xf32>
    %101 = arith.mulf %100, %99 : vector<16x32xf32>
    %102 = arith.mulf %99, %99 : vector<16x32xf32>
    %103 = arith.mulf %102, %99 : vector<16x32xf32>
    %cst_38 = arith.constant 4.471500e-02 : f32
    %104 = vector.broadcast %cst_38 : f32 to vector<16x32xf32>
    %105 = arith.mulf %104, %103 : vector<16x32xf32>
    %106 = arith.addf %99, %105 : vector<16x32xf32>
    %cst_39 = arith.constant 0.797884583 : f32
    %107 = vector.broadcast %cst_39 : f32 to vector<16x32xf32>
    %108 = arith.mulf %107, %106 : vector<16x32xf32>
    %109 = math.tanh %108 : vector<16x32xf32>
    %cst_40 = arith.constant 1.000000e+00 : f32
    %110 = vector.broadcast %cst_40 : f32 to vector<16x32xf32>
    %111 = arith.addf %110, %109 : vector<16x32xf32>
    %112 = arith.mulf %101, %111 : vector<16x32xf32>
    %c0_41 = arith.constant 0 : index
    %c0_42 = arith.constant 0 : index
    %113 = vector.load %arg7[%c0_41, %c0_42] : memref<16x32xf32, #tpu.memory_space<vmem>>, vector<16x32xf32>
    tpu.vector_store %arg7[%c0_41, %c0_42], %112 {strides = array<i32>} : memref<16x32xf32, #tpu.memory_space<vmem>>, vector<16x32xf32>,
    return
  }
  func.func @transform_0(%arg0: i32) -> (i32, i32) {
    %c0_i32 = arith.constant 0 : i32
    %c0_i32_0 = arith.constant 0 : i32
    return %c0_i32, %arg0 : i32, i32
  }
  func.func @transform_1(%arg0: i32) -> (i32, i32) {
    %c0_i32 = arith.constant 0 : i32
    %c0_i32_0 = arith.constant 0 : i32
    %c0_i32_1 = arith.constant 0 : i32
    return %c0_i32, %c0_i32_0 : i32, i32
  }
  func.func @transform_2(%arg0: i32) -> (i32, i32) {
    %c0_i32 = arith.constant 0 : i32
    %c0_i32_0 = arith.constant 0 : i32
    %c0_i32_1 = arith.constant 0 : i32
    return %c0_i32, %c0_i32_0 : i32, i32
  }
  func.func @transform_3(%arg0: i32) -> (i32, i32) {
    %c0_i32 = arith.constant 0 : i32
    %c0_i32_0 = arith.constant 0 : i32
    %c0_i32_1 = arith.constant 0 : i32
    return %c0_i32, %c0_i32_0 : i32, i32
  }
  func.func @transform_4(%arg0: i32) -> (i32, i32) {
    %c0_i32 = arith.constant 0 : i32
    %c0_i32_0 = arith.constant 0 : i32
    %c0_i32_1 = arith.constant 0 : i32
    return %c0_i32, %c0_i32_0 : i32, i32
  }
  func.func @transform_5(%arg0: i32) -> (i32, i32) {
    %c0_i32 = arith.constant 0 : i32
    %c0_i32_0 = arith.constant 0 : i32
    %c0_i32_1 = arith.constant 0 : i32
    return %c0_i32, %c0_i32_0 : i32, i32
  }
  func.func @transform_6(%arg0: i32) -> (i32, i32) {
    %c0_i32 = arith.constant 0 : i32
    %c0_i32_0 = arith.constant 0 : i32
    return %c0_i32, %arg0 : i32, i32
  }
}

</mosaic_0001>

<bundles_post_ra>
// kernel: tpu_custom_call.1
= control target key start
LH: loop header
LB: loop body
LE: loop exit
PB: predicated region body
PF: predicated region fallthrough
CT: control target
= control target key end

     0   :  { %s497_s0 = inlined_call_operand.vmem [shape: f32[8,32], index: 0, kind: input, shape index: {}]   ;;  %s498_s1 = inlined_call_operand.vmem [shape: f32[32,24], index: 1, kind: input, shape index: {}]   ;;  %s499_s2 = inlined_call_operand.vmem [shape: f32[16,1], index: 2, kind: input, shape index: {}]   ;;  %s500_s3 = inlined_call_operand.vmem [shape: f32[16,1], index: 3, kind: input, shape index: {}]   ;;  %s501_s4 = inlined_call_operand.vmem [shape: f32[16,48], index: 4, kind: input, shape index: {}]   ;;  %s502_s5 = inlined_call_operand.vmem [shape: f32[16,1], index: 5, kind: input, shape index: {}]   ;;  %s503_s6 = inlined_call_operand.hbm [shape: f32[16,32], index: 6, kind: output, shape index: {}]  }
   0x1   :  { %v46_v0 = vld [vmem:[%s497_s0] sm:$0xff] }
   0x2   :  { %11 = vsyncpa [#allocation3], 0  ;;  %s361_s23 = smov 32   ;;  %vm51_vm0 = vcmask 1047808   ;;  %s362_s24 = smov 127   ;;  %v24_v5 = vlaneseq  ;;  %v114_v7 = vld [vmem:[%s499_s2 + $0x8] sm:$0xff] }
   0x3   :  { %52 = vrot.lane.b32.xlu0 %v46_v0, %s361_s23  ;;  %s363_s25 = smov 97   ;;  %v364_v8 = vmov 0   ;;  %v113_v10 = vld [vmem:[%s499_s2] sm:$0xff]  ;;  %vm71_vm3 = vcmask 195584   ;;  %v48_v16 = vld [vmem:[%s498_s1 + $0x8] sm:$0xff]  ;;  %v49_v41 = vld [vmem:[%s498_s1 + $0x10] sm:$0xff] }
   0x4   :  { %v25_v6 = vand.u32 127, %v24_v5  ;;  %320 = vset.pattern.permute.xlu2 %v364_v8  ;;  %321 = vset.pattern.permute.xlu0 %v364_v8  ;;  %v47_v14 = vld [vmem:[%s498_s1] sm:$0xff]  ;;  %v50_v42 = vld [vmem:[%s498_s1 + $0x18] sm:$0xff]  ;;  %v146_v52 = vld [vmem:[%s500_s3 + $0x8] sm:$0xff]  ;;  %vm203_vm4 = vcmask 392192   ;;  %vm271_vm5 = vcmask 261120  }
   0x5   :  { %122 = vperm.xlu2 %320, %v114_v7   ;;  %322 = vset.pattern.permute.xlu1 %v364_v8  ;;  %v191_v51 = vld [vmem:[%s502_s5] sm:$0xff]  ;;  %v192_v53 = vld [vmem:[%s502_s5 + $0x8] sm:$0xff]  ;;  %s367_s0 = smov 8  }
   0x6   :  { %v30_v9 = vand.u32 15, %v25_v6  ;;  %v145_v54 = vld [vmem:[%s500_s3] sm:$0xff]  ;;  %v160_v59 = vld [vmem:[%s501_s4 + $0x8] sm:$0xff] }
   0x7   :  { %v159_v58 = vld [vmem:[%s501_s4] sm:$0xff]  ;;  %s365_s4 = smov [#allocation2]  }
   0x8   :  { %v418_v11 = vadd.s32 1, %v30_v9  ;;  %v425_v13 = vadd.s32 4294967295, %v30_v9  ;;  %s278_s21 = sshll.u32 %s365_s4, 4  ;;  %s279_s21 = int_to_ptr.vmem [resolvable:$true] %s278_s21 }
   0xa   :  { %vm44_vm1 = vcmp.lt.s32.totalorder %v418_v11, 16  ;;  %vm39_vm2 = vcmp.ge.s32.totalorder %v425_v13, 0 }
   0xd   :  { %117 = vperm.xlu2 %320, %v113_v10  }
  0x5f   :  { %v123_v17 = vpop.permute.xlu2 %122 }
  0x67   :  { %v118_v18 = vpop.permute.xlu2 %117 }
  0x75   :  { %v53_v1 = vpop.permute.xlu0 %52 }
  0x76   :  { %v54_v2 = vsel %vm51_vm0, %v53_v1, %v46_v0 }
  0x77   :  { %55 = vrot.lane.b32.xlu0 %v54_v2, %s361_s23 }
  0xe9   :  { %v56_v3 = vpop.permute.xlu0 %55 }
  0xea   :  { %v57_v4 = vsel %vm51_vm0, %v56_v3, %v46_v0 }
  0xeb   :  { %67 = vrot.lane.b32.xlu1 %v57_v4, %s362_s24 }
  0xf3   :  { %61 = vrot.lane.b32.xlu1 %v57_v4, %s363_s25 }
 0x15d   :  { %v68_v12 = vpop.permute.xlu1 %67 }
 0x15e   :  { %292 = vmatpush.msk.msra.mxu0 %vm44_vm1, %v68_v12  ;;  %304 = vmatpush.msk.msra.mxu2 %vm44_vm1, %v68_v12 }
 0x160   :  { %98 = vmatpush.msra.mxu0 %v46_v0  ;;  %305 = vmatpush.msra.mxu2 %v46_v0 }
 0x165   :  { %v62_v15 = vpop.permute.xlu1 %61 }
 0x166   :  { %293 = vmatpush.msk.msra.mxu0 %vm39_vm2, %v62_v15  ;;  %306 = vmatpush.msk.msra.mxu2 %vm39_vm2, %v62_v15 }
 0x167   :  { %294 = vmatmul.msk.f32.vlgmr.msra.gmra.mxu0 %vm71_vm3, %v47_v14  ;;  %296 = vmatmul.msk.f32.vlgmr.msra.gmra.mxu2 %vm71_vm3, %v49_v41 }
 0x16f   :  { %295 = vmatmul.msk.f32.gmra.mxu0 %vm71_vm3, %v48_v16  ;;  %297 = vmatmul.msk.f32.gmra.mxu2 %vm71_vm3, %v50_v42 }
 0x1e4   :  { %v101_v19 = vpop.f32.mrf.mxu0 }
 0x1e5   :  { %v125_v20 = vadd.f32 %v118_v18, %v101_v19 }
 0x1e7   :  { %v129_v21 = vmul.f32 %v125_v20, %v125_v20  ;;  %v127_v34 = vmul.f32 0.5, %v125_v20 }
 0x1e9   :  { %v131_v22 = vmul.f32 %v129_v21, %v125_v20 }
 0x1ea   :  { %v107_v11 = vpop.f32.mrf.mxu2 }
 0x1eb   :  { %v133_v23 = vmul.f32 0.044715, %v131_v22 }
 0x1ec   :  { %v104_v24 = vpop.f32.mrf.mxu0 }
 0x1ed   :  { %v135_v25 = vadd.f32 %v133_v23, %v125_v20  ;;  %v126_v26 = vadd.f32 %v123_v17, %v104_v24 }
 0x1ef   :  { %v137_v27 = vmul.f32 0.7978846, %v135_v25  ;;  %v130_v28 = vmul.f32 %v126_v26, %v126_v26  ;;  %v128_v38 = vmul.f32 0.5, %v126_v26 }
 0x1f1   :  { %323 = vtanh.f32 %v137_v27  ;;  %v132_v29 = vmul.f32 %v130_v28, %v126_v26 }
 0x1f2   :  { %v110_v22 = vpop.f32.mrf.mxu2 }
 0x1f3   :  { %v134_v30 = vmul.f32 0.044715, %v132_v29 }
 0x1f5   :  { %v136_v31 = vadd.f32 %v134_v30, %v126_v26 }
 0x1f7   :  { %v324_v32 = vpop.eup %323  ;;  %v138_v33 = vmul.f32 0.7978846, %v136_v31 }
 0x1f8   :  { %v141_v35 = vadd.f32 1.0, %v324_v32 }
 0x1f9   :  { %325 = vtanh.f32 %v138_v33 }
 0x1fa   :  { %v143_v36 = vmul.f32 %v141_v35, %v127_v34 }
 0x1fc   :  { %161 = vrot.lane.b32.xlu1 %v143_v36, %s361_s23 }
 0x1ff   :  { %v326_v37 = vpop.eup %325 }
 0x200   :  { %v142_v39 = vadd.f32 1.0, %v326_v37 }
 0x202   :  { %v144_v40 = vmul.f32 %v142_v39, %v128_v38 }
 0x204   :  { %164 = vrot.lane.b32.xlu0 %v144_v40, %s361_s23 }
 0x26e   :  { %v162_v43 = vpop.permute.xlu1 %161 }
 0x26f   :  { %v163_v44 = vsel %vm51_vm0, %v162_v43, %v143_v36 }
 0x270   :  { %167 = vrot.lane.b32.xlu0 %v163_v44, %s361_s23 }
 0x276   :  { %v165_v45 = vpop.permute.xlu0 %164 }
 0x277   :  { %v166_v46 = vsel %vm51_vm0, %v165_v45, %v144_v40 }
 0x278   :  { %169 = vrot.lane.b32.xlu2 %v166_v46, %s361_s23 }
 0x2d2   :  { %v170_v47 = vpop.permute.xlu2 %169 }
 0x2d3   :  { %v172_v48 = vsel %vm51_vm0, %v170_v47, %v144_v40 }
 0x2d4   :  { %177 = vrot.lane.b32.xlu0 %v172_v48, %s363_s25  ;;  %185 = vrot.lane.b32.xlu1 %v172_v48, %s362_s24 }
 0x2dc   :  { %200 = vperm.xlu0 %321, %v192_v53  }
 0x2e2   :  { %v168_v49 = vpop.permute.xlu0 %167 }
 0x2e3   :  { %v171_v50 = vsel %vm51_vm0, %v168_v49, %v143_v36 }
 0x2e4   :  { %175 = vrot.lane.b32.xlu1 %v171_v50, %s363_s25  ;;  %183 = vrot.lane.b32.xlu2 %v171_v50, %s362_s24  ;;  %s280_s24 = sshll.u32 %s503_s6, 4  ;;  %s366_s25 = smov 128   ;;  %s281_s24 = int_to_ptr.hbm [resolvable:$true] %s280_s24 }
 0x2ec   :  { %195 = vperm.xlu2 %320, %v191_v51   ;;  %149 = vperm.xlu1 %322, %v145_v54  }
 0x2f4   :  { %154 = vperm.xlu2 %320, %v146_v52  }
 0x33e   :  { %v184_v56 = vpop.permute.xlu2 %183 }
 0x346   :  { %v186_v55 = vpop.permute.xlu1 %185  ;;  %v178_v57 = vpop.permute.xlu0 %177 }
 0x347   :  { %298 = vmatpush.msk.msra.mxu1 %vm44_vm1, %v186_v55  ;;  %307 = vmatpush.msk.msra.mxu3 %vm44_vm1, %v186_v55  ;;  %v196_v61 = vpop.permute.xlu2 %195 }
 0x349   :  { %299 = vmatpush.msk.msra.mxu1 %vm44_vm1, %v184_v56  ;;  %308 = vmatpush.msk.msra.mxu3 %vm44_vm1, %v184_v56 }
 0x34b   :  { %222 = vmatpush.msra.mxu1 %v144_v40  ;;  %309 = vmatpush.msra.mxu3 %v144_v40 }
 0x34d   :  { %223 = vmatpush.msra.mxu1 %v143_v36  ;;  %310 = vmatpush.msra.mxu3 %v143_v36 }
 0x34e   :  { %v201_v1 = vpop.permute.xlu0 %200 }
 0x34f   :  { %300 = vmatpush.msk.msra.mxu1 %vm39_vm2, %v178_v57  ;;  %311 = vmatpush.msk.msra.mxu3 %vm39_vm2, %v178_v57  ;;  %v155_v23 = vpop.permute.xlu2 %154 }
 0x350   :  { %v158_v27 = vadd.f32 %v155_v23, %v110_v22 }
 0x356   :  { %v176_v60 = vpop.permute.xlu1 %175 }
 0x357   :  { %301 = vmatpush.msk.msra.mxu1 %vm39_vm2, %v176_v60  ;;  %312 = vmatpush.msk.msra.mxu3 %vm39_vm2, %v176_v60 }
 0x358   :  { %302 = vmatmul.msk.f32.vlgmr.msra.gmra.mxu1 %vm203_vm4, %v159_v58  ;;  %303 = vmatmul.msk.f32.vlgmr.msra.gmra.mxu3 %vm203_vm4, %v160_v59 }
 0x35e   :  { %v150_v15 = vpop.permute.xlu1 %149 }
 0x35f   :  { %v157_v18 = vadd.f32 %v150_v15, %v107_v11 }
 0x3d5   :  { %v227_v62 = vpop.f32.mrf.mxu1 }
 0x3d6   :  { %v228_v63 = vadd.f32 %v227_v62, %v196_v61 }
 0x3d8   :  { %v235_v0 = vmul.f32 %v228_v63, %v228_v63  ;;  %v233_v16 = vmul.f32 0.5, %v228_v63 }
 0x3da   :  { %v237_v2 = vmul.f32 %v235_v0, %v228_v63 }
 0x3db   :  { %v230_v3 = vpop.f32.mrf.mxu3 }
 0x3dc   :  { %v239_v4 = vmul.f32 0.044715, %v237_v2  ;;  %v231_v5 = vadd.f32 %v230_v3, %v201_v1 }
 0x3de   :  { %v241_v6 = vadd.f32 %v239_v4, %v228_v63  ;;  %v236_v7 = vmul.f32 %v231_v5, %v231_v5  ;;  %v234_v24 = vmul.f32 0.5, %v231_v5 }
 0x3e0   :  { %v238_v8 = vmul.f32 %v236_v7, %v231_v5  ;;  %v243_v9 = vmul.f32 0.7978846, %v241_v6 }
 0x3e2   :  { %v240_v10 = vmul.f32 0.044715, %v238_v8  ;;  %327 = vtanh.f32 %v243_v9 }
 0x3e4   :  { %v242_v12 = vadd.f32 %v240_v10, %v231_v5 }
 0x3e6   :  { %v244_v13 = vmul.f32 0.7978846, %v242_v12 }
 0x3e8   :  { %v328_v14 = vpop.eup %327  ;;  %329 = vtanh.f32 %v244_v13 }
 0x3e9   :  { %v247_v17 = vadd.f32 1.0, %v328_v14 }
 0x3eb   :  { %v249_v19 = vmul.f32 %v247_v17, %v233_v16 }
 0x3ed   :  { %v251_v20 = vadd.f32 %v249_v19, %v157_v18 }
 0x3ee   :  { %v330_v21 = vpop.eup %329 }
 0x3ef   :  { %v248_v25 = vadd.f32 1.0, %v330_v21  ;;  %v255_v26 = vmul.f32 %v251_v20, %v251_v20  ;;  %v253_v40 = vmul.f32 0.5, %v251_v20 }
 0x3f1   :  { %v250_v28 = vmul.f32 %v248_v25, %v234_v24  ;;  %v257_v29 = vmul.f32 %v255_v26, %v251_v20 }
 0x3f3   :  { %v252_v30 = vadd.f32 %v250_v28, %v158_v27  ;;  %v259_v31 = vmul.f32 0.044715, %v257_v29 }
 0x3f5   :  { %v256_v32 = vmul.f32 %v252_v30, %v252_v30  ;;  %v261_v33 = vadd.f32 %v259_v31, %v251_v20  ;;  %v254_v44 = vmul.f32 0.5, %v252_v30 }
 0x3f7   :  { %v258_v34 = vmul.f32 %v256_v32, %v252_v30  ;;  %v263_v35 = vmul.f32 0.7978846, %v261_v33 }
 0x3f9   :  { %331 = vtanh.f32 %v263_v35  ;;  %v260_v36 = vmul.f32 0.044715, %v258_v34 }
 0x3fb   :  { %v262_v37 = vadd.f32 %v260_v36, %v252_v30 }
 0x3fd   :  { %v264_v38 = vmul.f32 0.7978846, %v262_v37 }
 0x3ff   :  { %v332_v39 = vpop.eup %331  ;;  %333 = vtanh.f32 %v264_v38 }
 0x400   :  { %v267_v41 = vadd.f32 1.0, %v332_v39 }
 0x402   :  { %v269_v42 = vmul.f32 %v267_v41, %v253_v40 }
 0x404   :  { %272 = vst.msk [vmem:[#allocation2] sm:$0xff] %vm271_vm5, %v269_v42 }
 0x405   :  { %v334_v43 = vpop.eup %333 }
 0x406   :  { %v268_v45 = vadd.f32 1.0, %v334_v43 }
 0x408   :  { %v270_v46 = vmul.f32 %v268_v45, %v254_v44 }
 0x40a   :  { %273 = vst.msk [vmem:[#allocation2 + $0x8] sm:$0xff] %vm271_vm5, %v270_v46 }
 0x40b   :  { %286 = dma.vmem_to_hbm [thread:$0]  %s279_s21, 256, %s281_s24, [#allocation3], %s366_s25, %s366_s25, %s367_s0  }
 0x40c   :  { %359 = dma.done.wait [#allocation3], 256  }
 0x40d   :  { %360 = vsyncadd [#allocation3], 4294967040 }
 0x40e   :  { %291 = vsyncpa [#allocation3], 1 }

</bundles_post_ra>
